<compile_context>
chip_gen: v6e
topology: v6e:2x2x1
jax: 0.10.0
libtpu: 0.0.40
codegen_flags: <defaults>
</compile_context>

<pallas_src>
from functools import partial

import jax
import jax.numpy as jnp
from jax.experimental import pallas as pl
from jax.experimental.pallas import tpu as pltpu

LANE = 128


def _round_up(x, m):
    return (x + m - 1) // m * m


def _pick_hw_tile(hw):
    """Largest tile in {512,...,16}; multiples of 16 for bf16 sublane packing."""
    for t in (512, 256, 128, 64, 32, 16):
        if hw >= t:
            return t
    return 16


def _pick_batch_tile(n, tile, target_rows=512, max_rows=2048):
    """Divisor of n so b_tile*tile is MXU-friendly (>=target rows) but VMEM-safe."""
    best = 1
    for bt in range(1, n + 1):
        if n % bt:
            continue
        if bt * tile > max_rows:
            break
        best = bt
        if bt * tile >= target_rows:
            break
    # keep >=2 parallel batch blocks for v7x megacore when it costs nothing
    if best > 1 and best % 2 == 0 and n // best == 1 and (best // 2) * tile >= target_rows:
        best //= 2
    return best


# ----------------------------- Pallas kernel -------------------------------

def _fused_forward_kernel(patch_ref, w_stem_ref, b_stem_ref,
                          w1_ref, b1_ref, w2_ref, b2_ref,
                          wc_ref, bc_ref,
                          logits_ref, ft_ref,
                          acc_ref, *, inv_hw, hw_true, hw_padded):
    """Grid = (batch blocks n, HW tiles t). t is the pooling reduction axis."""
    t = pl.program_id(1)

    @pl.when(t == 0)
    def _():
        acc_ref[...] = jnp.zeros_like(acc_ref)

    bt, tile, kp = patch_ref.shape
    c3 = acc_ref.shape[-1]

    # One big-M slab for the MXU: (B_TILE*HW_TILE, Kp), bf16.
    p = patch_ref[...].reshape(bt * tile, kp)

    # conv_stem (3x3 s2 folded to matmul over im2col patches) + ReLU
    h = jnp.dot(p, w_stem_ref[...], preferred_element_type=jnp.float32)
    h = jnp.maximum(h + b_stem_ref[...], 0.0)
    # block 1 (1x1 conv) + ReLU
    h = jnp.dot(h.astype(jnp.bfloat16), w1_ref[...],
                preferred_element_type=jnp.float32)
    h = jnp.maximum(h + b1_ref[...], 0.0)
    # block 2 (1x1 conv) + ReLU
    h = jnp.dot(h.astype(jnp.bfloat16), w2_ref[...],
                preferred_element_type=jnp.float32)
    h = jnp.maximum(h + b2_ref[...], 0.0)              # (bt*tile, C3p) f32

    h3 = h.reshape(bt, tile, c3)
    if hw_padded != hw_true:
        # mask zero-padded HW rows so ReLU(bias) garbage never reaches the pool
        pos = t * tile + jax.lax.broadcasted_iota(jnp.int32, (tile, 1), 0)
        h3 = jnp.where((pos < hw_true)[None], h3, 0.0)

    # Partial pool: accumulate 8-sublane groups with plain VPU adds; the single
    # cross-sublane reduce is deferred to the finalize step.
    part = h3[:, 0:8, :]
    for g in range(1, tile // 8):
        part = part + h3[:, g * 8:(g + 1) * 8, :]
    acc_ref[...] += part                               # (bt, 8, C3p)

    @pl.when(t == pl.num_programs(1) - 1)
    def _():
        pooled = acc_ref[...].sum(axis=1) * inv_hw     # (bt, C3p) pooled features
        ft_ref[...] = pooled.astype(ft_ref.dtype)
        # eval-mode dropout == identity; classifier rides on the batch block
        logits = jnp.dot(pooled.astype(jnp.bfloat16), wc_ref[...],
                         preferred_element_type=jnp.float32) + bc_ref[...]
        logits_ref[...] = logits.astype(logits_ref.dtype)


def fused_forward(patches, w_stem, b_stem, w1, b1, w2, b2, wc, bc):
    """patches: (N, HW, Kp) bf16.  Returns (logits (N, NCp), ft (N, C3p)) f32."""
    N, HW, Kp = patches.shape
    C1 = w_stem.shape[1]
    C2 = w1.shape[1]
    C3 = w2.shape[1]
    NC = wc.shape[1]

    tile = _pick_hw_tile(HW)
    hwp = _round_up(HW, tile)
    if hwp != HW:
        patches = jnp.pad(patches, ((0, 0), (0, hwp - HW), (0, 0)))
    num_t = hwp // tile

    b_tile = _pick_batch_tile(N, tile)
    nb = N // b_tile
    patches = patches.reshape(nb, b_tile, hwp, Kp)

    kernel = partial(_fused_forward_kernel, inv_hw=1.0 / float(HW),
                     hw_true=HW, hw_padded=hwp)

    logits, ft = pl.pallas_call(
        kernel,
        out_shape=(
            jax.ShapeDtypeStruct((nb, b_tile, NC), jnp.float32),
            jax.ShapeDtypeStruct((nb, b_tile, C3), jnp.float32),
        ),
        grid=(nb, num_t),
        in_specs=[
            # patch slab; leading size-1 block dim squeezed out of the kernel view
            pl.BlockSpec((None, b_tile, tile, Kp), lambda n, t: (n, 0, t, 0)),
            # VMEM-resident weights / biases (constant index maps)
            pl.BlockSpec((Kp, C1), lambda n, t: (0, 0)),
            pl.BlockSpec((1, C1), lambda n, t: (0, 0)),
            pl.BlockSpec((C1, C2), lambda n, t: (0, 0)),
            pl.BlockSpec((1, C2), lambda n, t: (0, 0)),
            pl.BlockSpec((C2, C3), lambda n, t: (0, 0)),
            pl.BlockSpec((1, C3), lambda n, t: (0, 0)),
            pl.BlockSpec((C3, NC), lambda n, t: (0, 0)),
            pl.BlockSpec((1, NC), lambda n, t: (0, 0)),
        ],
        out_specs=(
            pl.BlockSpec((None, b_tile, NC), lambda n, t: (n, 0, 0)),
            pl.BlockSpec((None, b_tile, C3), lambda n, t: (n, 0, 0)),
        ),
        scratch_shapes=[pltpu.VMEM((b_tile, 8, C3), jnp.float32)],
        compiler_params=pltpu.CompilerParams(
            dimension_semantics=("parallel", "arbitrary"),
            # allow XLA to fold the im2col producer into the patch input read
            allow_input_fusion=[True] + [False] * 8,
        ),
    )(patches, w_stem, b_stem, w1, b1, w2, b2, wc, bc)

    return logits.reshape(N, NC), ft.reshape(N, C3)


# ----------------------------- glue (plain JAX) ----------------------------

def build_patches_bf16(x_nhwc, kp):
    """3x3 / stride 2 / pad 1 im2col emitted directly as one lane-padded bf16
    tensor. The shifted views, the K zero-pad and the bf16 cast live in a single
    fused XLA expression, so the patch tensor hits HBM exactly once."""
    N, H, W, C = x_nhwc.shape
    xp = jnp.pad(x_nhwc.astype(jnp.bfloat16), ((0, 0), (1, 1), (1, 1), (0, 0)))
    Ho, Wo = H // 2, W // 2
    cols = [xp[:, dh:dh + 2 * Ho:2, dw:dw + 2 * Wo:2, :]
            for dh in range(3) for dw in range(3)]
    pad_k = kp - 9 * C
    if pad_k:
        cols.append(jnp.zeros((N, Ho, Wo, pad_k), jnp.bfloat16))
    return jnp.concatenate(cols, axis=-1).reshape(N, Ho * Wo, kp)


def _pad2(a, shape):
    out = jnp.zeros(shape, a.dtype)
    return out.at[: a.shape[0], : a.shape[1]].set(a)


class TimmModelPallas:
    """JAX/Pallas re-implementation of TimmModel.forward (eval mode)."""

    def __init__(self, key, in_ch=3, stem_ch=8, blk1_ch=16, blk2_ch=32,
                 num_classes=10, drop_rate=0.2):
        ks = jax.random.split(key, 8)
        s = 0.1
        self.in_ch = in_ch
        self.stem_ch = stem_ch
        self.blk1_ch = blk1_ch
        self.blk2_ch = blk2_ch
        self.num_classes = num_classes
        self.drop_rate = drop_rate
        self.is_efficientnet = True
        self.training = False

        # padded (lane-dense) parameter widths
        self.kp = _round_up(9 * in_ch, 32)          # 27 -> 32
        c1 = _round_up(stem_ch, LANE)               # 128
        c2 = _round_up(blk1_ch, LANE)               # 128
        c3 = _round_up(blk2_ch, LANE)               # 128
        nc = _round_up(num_classes, LANE)           # 128
        self.c3p, self.ncp = c3, nc

        # true-shaped random params, zero-padded into lane-dense buffers.
        w_stem = s * jax.random.normal(ks[0], (9 * in_ch, stem_ch), jnp.float32)
        b_stem = s * jax.random.normal(ks[1], (1, stem_ch), jnp.float32)
        w_b1 = s * jax.random.normal(ks[2], (stem_ch, blk1_ch), jnp.float32)
        b_b1 = s * jax.random.normal(ks[3], (1, blk1_ch), jnp.float32)
        w_b2 = s * jax.random.normal(ks[4], (blk1_ch, blk2_ch), jnp.float32)
        b_b2 = s * jax.random.normal(ks[5], (1, blk2_ch), jnp.float32)
        w_cls = s * jax.random.normal(ks[6], (blk2_ch, num_classes), jnp.float32)
        b_cls = s * jax.random.normal(ks[7], (1, num_classes), jnp.float32)

        self.w_stem = _pad2(w_stem, (self.kp, c1)).astype(jnp.bfloat16)
        self.b_stem = _pad2(b_stem, (1, c1))
        self.w_b1 = _pad2(w_b1, (c1, c2)).astype(jnp.bfloat16)
        self.b_b1 = _pad2(b_b1, (1, c2))
        self.w_b2 = _pad2(w_b2, (c2, c3)).astype(jnp.bfloat16)
        self.b_b2 = _pad2(b_b2, (1, c3))
        self.w_cls = _pad2(w_cls, (c3, nc)).astype(jnp.bfloat16)
        self.b_cls = _pad2(b_cls, (1, nc))

    def forward(self, x_nchw):
        # PyTorch NCHW -> kernel NHWC
        x = jnp.transpose(x_nchw, (0, 2, 3, 1)).astype(jnp.float32)

        # --- model.forward_features: single-write bf16 patch build, then one
        #     fused Pallas pass (stem -> blocks -> pool -> classifier) ---
        patches = build_patches_bf16(x, self.kp)                    # (N, HW, Kp)

        logits_p, ft_p = fused_forward(
            patches,
            self.w_stem, self.b_stem,
            self.w_b1, self.b_b1,
            self.w_b2, self.b_b2,
            self.w_cls, self.b_cls,
        )

        # slice padded lanes back to the module's true widths
        logits = logits_p[:, : self.num_classes]
        ft = ft_p[:, : self.blk2_ch]
        return logits, ft                                            # (x, ft)


def reference_forward(model, x_nchw):
    """Pure-JAX reference mirroring the kernel's numerics (bf16 MXU inputs)."""
    x = jnp.transpose(x_nchw, (0, 2, 3, 1)).astype(jnp.float32)
    p = build_patches_bf16(x, model.kp)
    h = jnp.einsum('nik,kc->nic', p, model.w_stem,
                   preferred_element_type=jnp.float32)
    h = jnp.maximum(h + model.b_stem, 0.0)
    h = jnp.einsum('nic,cd->nid', h.astype(jnp.bfloat16), model.w_b1,
                   preferred_element_type=jnp.float32)
    h = jnp.maximum(h + model.b_b1, 0.0)
    h = jnp.einsum('nid,de->nie', h.astype(jnp.bfloat16), model.w_b2,
                   preferred_element_type=jnp.float32)
    h = jnp.maximum(h + model.b_b2, 0.0)
    ft = jnp.mean(h, axis=1)
    logits = jnp.dot(ft.astype(jnp.bfloat16), model.w_cls,
                     preferred_element_type=jnp.float32) + model.b_cls
    return logits[:, : model.num_classes], ft[:, : model.blk2_ch]


if __name__ == "__main__":
    key = jax.random.PRNGKey(0)
    k_param, k_x = jax.random.split(key)

    model = TimmModelPallas(k_param)
    x = jax.random.normal(k_x, (2, 3, 16, 16), jnp.float32)   # NCHW like PyTorch

    fwd = jax.jit(model.forward)
    logits, ft = fwd(x)
    jax.block_until_ready((logits, ft))

    assert logits.shape == (2, 10), logits.shape
    assert ft.shape == (2, 32), ft.shape
    assert bool(jnp.all(jnp.isfinite(logits))) and bool(jnp.all(jnp.isfinite(ft)))

    ref_logits, ref_ft = reference_forward(model, x)
    assert jnp.allclose(logits, ref_logits, rtol=2e-2, atol=2e-2)
    assert jnp.allclose(ft, ref_ft, rtol=2e-2, atol=2e-2)
    print("KERNEL_OK")
</pallas_src>

<mosaic_0001>
module attributes {stable_mosaic.version = 11 : i64} {
  func.func @_fused_forward_kernel(%arg0: i32, %arg1: i32, %arg2: memref<1x2x64x32xbf16, #tpu.memory_space<vmem>>, %arg3: memref<32x128xbf16, #tpu.memory_space<vmem>>, %arg4: memref<1x128xf32, #tpu.memory_space<vmem>>, %arg5: memref<128x128xbf16, #tpu.memory_space<vmem>>, %arg6: memref<1x128xf32, #tpu.memory_space<vmem>>, %arg7: memref<128x128xbf16, #tpu.memory_space<vmem>>, %arg8: memref<1x128xf32, #tpu.memory_space<vmem>>, %arg9: memref<128x128xbf16, #tpu.memory_space<vmem>>, %arg10: memref<1x128xf32, #tpu.memory_space<vmem>>, %arg11: memref<1x2x128xf32, #tpu.memory_space<vmem>>, %arg12: memref<1x2x128xf32, #tpu.memory_space<vmem>>, %arg13: memref<2x8x128xf32, #tpu.memory_space<vmem>>) attributes {dimension_semantics = [#tpu.dimension_semantics<parallel>, #tpu.dimension_semantics<arbitrary>], iteration_bounds = array<i64: 1, 1>, scalar_prefetch = 0 : i64, scratch_operands = 1 : i64, tpu.core_type = #tpu.core_type<tc>, window_params = [{transform_indices = @transform_0, window_bounds = array<i64: 1, 2, 64, 32>}, {pipeline_mode = #tpu.pipeline_mode<synchronous>, transform_indices = @transform_1, window_bounds = array<i64: 32, 128>}, {pipeline_mode = #tpu.pipeline_mode<synchronous>, transform_indices = @transform_2, window_bounds = array<i64: 1, 128>}, {pipeline_mode = #tpu.pipeline_mode<synchronous>, transform_indices = @transform_3, window_bounds = array<i64: 128, 128>}, {pipeline_mode = #tpu.pipeline_mode<synchronous>, transform_indices = @transform_4, window_bounds = array<i64: 1, 128>}, {pipeline_mode = #tpu.pipeline_mode<synchronous>, transform_indices = @transform_5, window_bounds = array<i64: 128, 128>}, {pipeline_mode = #tpu.pipeline_mode<synchronous>, transform_indices = @transform_6, window_bounds = array<i64: 1, 128>}, {pipeline_mode = #tpu.pipeline_mode<synchronous>, transform_indices = @transform_7, window_bounds = array<i64: 128, 128>}, {pipeline_mode = #tpu.pipeline_mode<synchronous>, transform_indices = @transform_8, window_bounds = array<i64: 1, 128>}, {transform_indices = @transform_9, window_bounds = array<i64: 1, 2, 128>}, {transform_indices = @transform_10, window_bounds = array<i64: 1, 2, 128>}]} {
    %c0_i32 = arith.constant 0 : i32
    %0 = arith.cmpi eq, %arg1, %c0_i32 : i32
    %1 = arith.extui %0 : i1 to i32
    %c0_i32_0 = arith.constant 0 : i32
    %2 = arith.cmpi ne, %1, %c0_i32_0 : i32
    scf.if %2 {
      %cst_29 = arith.constant 0.000000e+00 : f32
      %51 = vector.broadcast %cst_29 : f32 to vector<2x8x128xf32>
      %c0_30 = arith.constant 0 : index
      %c0_31 = arith.constant 0 : index
      %c0_32 = arith.constant 0 : index
      %52 = vector.load %arg13[%c0_30, %c0_31, %c0_32] : memref<2x8x128xf32, #tpu.memory_space<vmem>>, vector<2x8x128xf32>
      tpu.vector_store %arg13[%c0_30, %c0_31, %c0_32], %51 {strides = array<i32>} : memref<2x8x128xf32, #tpu.memory_space<vmem>>, vector<2x8x128xf32>,
    } else {
    }
    %c0 = arith.constant 0 : index
    %c0_1 = arith.constant 0 : index
    %c0_2 = arith.constant 0 : index
    %c0_3 = arith.constant 0 : index
    %3 = vector.load %arg2[%c0, %c0_1, %c0_2, %c0_3] : memref<1x2x64x32xbf16, #tpu.memory_space<vmem>>, vector<1x2x64x32xbf16>
    %4 = vector.shape_cast %3 : vector<1x2x64x32xbf16> to vector<2x64x32xbf16>
    %5 = vector.shape_cast %4 : vector<2x64x32xbf16> to vector<128x32xbf16>
    %c0_4 = arith.constant 0 : index
    %c0_5 = arith.constant 0 : index
    %6 = vector.load %arg3[%c0_4, %c0_5] : memref<32x128xbf16, #tpu.memory_space<vmem>>, vector<32x128xbf16>
    %cst = arith.constant dense<0.000000e+00> : vector<128x128xf32>
    %7 = tpu.matmul %5, %6, %cst {dimension_numbers = #tpu.dot_dimension_numbers<[1], [0], [0], [1], [0, 0, 1, 1], [], []>} : vector<128x32xbf16>, vector<32x128xbf16>, vector<128x128xf32> -> vector<128x128xf32>
    %c0_6 = arith.constant 0 : index
    %c0_7 = arith.constant 0 : index
    %8 = vector.load %arg4[%c0_6, %c0_7] : memref<1x128xf32, #tpu.memory_space<vmem>>, vector<1x128xf32>
    %9 = vector.broadcast %8 : vector<1x128xf32> to vector<128x128xf32>
    %10 = arith.addf %7, %9 : vector<128x128xf32>
    %cst_8 = arith.constant 0.000000e+00 : f32
    %11 = vector.broadcast %cst_8 : f32 to vector<128x128xf32>
    %12 = arith.maximumf %10, %11 : vector<128x128xf32>
    %13 = arith.truncf %12 : vector<128x128xf32> to vector<128x128xbf16>
    %c0_9 = arith.constant 0 : index
    %c0_10 = arith.constant 0 : index
    %14 = vector.load %arg5[%c0_9, %c0_10] : memref<128x128xbf16, #tpu.memory_space<vmem>>, vector<128x128xbf16>
    %cst_11 = arith.constant dense<0.000000e+00> : vector<128x128xf32>
    %15 = tpu.matmul %13, %14, %cst_11 {dimension_numbers = #tpu.dot_dimension_numbers<[1], [0], [0], [1], [0, 0, 1, 1], [], []>} : vector<128x128xbf16>, vector<128x128xbf16>, vector<128x128xf32> -> vector<128x128xf32>
    %c0_12 = arith.constant 0 : index
    %c0_13 = arith.constant 0 : index
    %16 = vector.load %arg6[%c0_12, %c0_13] : memref<1x128xf32, #tpu.memory_space<vmem>>, vector<1x128xf32>
    %17 = vector.broadcast %16 : vector<1x128xf32> to vector<128x128xf32>
    %18 = arith.addf %15, %17 : vector<128x128xf32>
    %cst_14 = arith.constant 0.000000e+00 : f32
    %19 = vector.broadcast %cst_14 : f32 to vector<128x128xf32>
    %20 = arith.maximumf %18, %19 : vector<128x128xf32>
    %21 = arith.truncf %20 : vector<128x128xf32> to vector<128x128xbf16>
    %c0_15 = arith.constant 0 : index
    %c0_16 = arith.constant 0 : index
    %22 = vector.load %arg7[%c0_15, %c0_16] : memref<128x128xbf16, #tpu.memory_space<vmem>>, vector<128x128xbf16>
    %cst_17 = arith.constant dense<0.000000e+00> : vector<128x128xf32>
    %23 = tpu.matmul %21, %22, %cst_17 {dimension_numbers = #tpu.dot_dimension_numbers<[1], [0], [0], [1], [0, 0, 1, 1], [], []>} : vector<128x128xbf16>, vector<128x128xbf16>, vector<128x128xf32> -> vector<128x128xf32>
    %c0_18 = arith.constant 0 : index
    %c0_19 = arith.constant 0 : index
    %24 = vector.load %arg8[%c0_18, %c0_19] : memref<1x128xf32, #tpu.memory_space<vmem>>, vector<1x128xf32>
    %25 = vector.broadcast %24 : vector<1x128xf32> to vector<128x128xf32>
    %26 = arith.addf %23, %25 : vector<128x128xf32>
    %cst_20 = arith.constant 0.000000e+00 : f32
    %27 = vector.broadcast %cst_20 : f32 to vector<128x128xf32>
    %28 = arith.maximumf %26, %27 : vector<128x128xf32>
    %29 = vector.shape_cast %28 : vector<128x128xf32> to vector<2x64x128xf32>
    %30 = vector.extract_strided_slice %29 {offsets = [0, 0, 0], sizes = [2, 8, 128], strides = [1, 1, 1]} : vector<2x64x128xf32> to vector<2x8x128xf32>
    %31 = vector.extract_strided_slice %29 {offsets = [0, 8, 0], sizes = [2, 8, 128], strides = [1, 1, 1]} : vector<2x64x128xf32> to vector<2x8x128xf32>
    %32 = arith.addf %30, %31 : vector<2x8x128xf32>
    %33 = vector.extract_strided_slice %29 {offsets = [0, 16, 0], sizes = [2, 8, 128], strides = [1, 1, 1]} : vector<2x64x128xf32> to vector<2x8x128xf32>
    %34 = arith.addf %32, %33 : vector<2x8x128xf32>
    %35 = vector.extract_strided_slice %29 {offsets = [0, 24, 0], sizes = [2, 8, 128], strides = [1, 1, 1]} : vector<2x64x128xf32> to vector<2x8x128xf32>
    %36 = arith.addf %34, %35 : vector<2x8x128xf32>
    %37 = vector.extract_strided_slice %29 {offsets = [0, 32, 0], sizes = [2, 8, 128], strides = [1, 1, 1]} : vector<2x64x128xf32> to vector<2x8x128xf32>
    %38 = arith.addf %36, %37 : vector<2x8x128xf32>
    %39 = vector.extract_strided_slice %29 {offsets = [0, 40, 0], sizes = [2, 8, 128], strides = [1, 1, 1]} : vector<2x64x128xf32> to vector<2x8x128xf32>
    %40 = arith.addf %38, %39 : vector<2x8x128xf32>
    %41 = vector.extract_strided_slice %29 {offsets = [0, 48, 0], sizes = [2, 8, 128], strides = [1, 1, 1]} : vector<2x64x128xf32> to vector<2x8x128xf32>
    %42 = arith.addf %40, %41 : vector<2x8x128xf32>
    %43 = vector.extract_strided_slice %29 {offsets = [0, 56, 0], sizes = [2, 8, 128], strides = [1, 1, 1]} : vector<2x64x128xf32> to vector<2x8x128xf32>
    %44 = arith.addf %42, %43 : vector<2x8x128xf32>
    %c0_21 = arith.constant 0 : index
    %c0_22 = arith.constant 0 : index
    %c0_23 = arith.constant 0 : index
    %45 = vector.load %arg13[%c0_21, %c0_22, %c0_23] : memref<2x8x128xf32, #tpu.memory_space<vmem>>, vector<2x8x128xf32>
    %46 = arith.addf %45, %44 : vector<2x8x128xf32>
    %c0_24 = arith.constant 0 : index
    %c0_25 = arith.constant 0 : index
    %c0_26 = arith.constant 0 : index
    %47 = vector.load %arg13[%c0_24, %c0_25, %c0_26] : memref<2x8x128xf32, #tpu.memory_space<vmem>>, vector<2x8x128xf32>
    tpu.vector_store %arg13[%c0_24, %c0_25, %c0_26], %46 {strides = array<i32>} : memref<2x8x128xf32, #tpu.memory_space<vmem>>, vector<2x8x128xf32>,
    %c0_i32_27 = arith.constant 0 : i32
    %48 = arith.cmpi eq, %arg1, %c0_i32_27 : i32
    %49 = arith.extui %48 : i1 to i32
    %c0_i32_28 = arith.constant 0 : i32
    %50 = arith.cmpi ne, %49, %c0_i32_28 : i32
    scf.if %50 {
      %c0_29 = arith.constant 0 : index
      %c0_30 = arith.constant 0 : index
      %c0_31 = arith.constant 0 : index
      %51 = vector.load %arg13[%c0_29, %c0_30, %c0_31] : memref<2x8x128xf32, #tpu.memory_space<vmem>>, vector<2x8x128xf32>
      %cst_32 = arith.constant dense<0.000000e+00> : vector<2x128xf32>
      %52 = vector.multi_reduction <add>, %51, %cst_32 [1] : vector<2x8x128xf32> to vector<2x128xf32>
      %cst_33 = arith.constant 1.562500e-02 : f32
      %53 = vector.broadcast %cst_33 : f32 to vector<2x128xf32>
      %54 = arith.mulf %52, %53 : vector<2x128xf32>
      %c0_34 = arith.constant 0 : index
      %c0_35 = arith.constant 0 : index
      %c0_36 = arith.constant 0 : index
      %55 = vector.load %arg12[%c0_34, %c0_35, %c0_36] : memref<1x2x128xf32, #tpu.memory_space<vmem>>, vector<1x2x128xf32>
      %56 = vector.shape_cast %55 : vector<1x2x128xf32> to vector<2x128xf32>
      %57 = vector.shape_cast %54 : vector<2x128xf32> to vector<1x2x128xf32>
      tpu.vector_store %arg12[%c0_34, %c0_35, %c0_36], %57 {strides = array<i32>} : memref<1x2x128xf32, #tpu.memory_space<vmem>>, vector<1x2x128xf32>,
      %58 = arith.truncf %54 : vector<2x128xf32> to vector<2x128xbf16>
      %c0_37 = arith.constant 0 : index
      %c0_38 = arith.constant 0 : index
      %59 = vector.load %arg9[%c0_37, %c0_38] : memref<128x128xbf16, #tpu.memory_space<vmem>>, vector<128x128xbf16>
      %cst_39 = arith.constant dense<0.000000e+00> : vector<2x128xf32>
      %60 = tpu.matmul %58, %59, %cst_39 {dimension_numbers = #tpu.dot_dimension_numbers<[1], [0], [0], [1], [0, 0, 1, 1], [], []>} : vector<2x128xbf16>, vector<128x128xbf16>, vector<2x128xf32> -> vector<2x128xf32>
      %c0_40 = arith.constant 0 : index
      %c0_41 = arith.constant 0 : index
      %61 = vector.load %arg10[%c0_40, %c0_41] : memref<1x128xf32, #tpu.memory_space<vmem>>, vector<1x128xf32>
      %62 = vector.broadcast %61 : vector<1x128xf32> to vector<2x128xf32>
      %63 = arith.addf %60, %62 : vector<2x128xf32>
      %c0_42 = arith.constant 0 : index
      %c0_43 = arith.constant 0 : index
      %c0_44 = arith.constant 0 : index
      %64 = vector.load %arg11[%c0_42, %c0_43, %c0_44] : memref<1x2x128xf32, #tpu.memory_space<vmem>>, vector<1x2x128xf32>
      %65 = vector.shape_cast %64 : vector<1x2x128xf32> to vector<2x128xf32>
      %66 = vector.shape_cast %63 : vector<2x128xf32> to vector<1x2x128xf32>
      tpu.vector_store %arg11[%c0_42, %c0_43, %c0_44], %66 {strides = array<i32>} : memref<1x2x128xf32, #tpu.memory_space<vmem>>, vector<1x2x128xf32>,
    } else {
    }
    return
  }
  func.func @transform_0(%arg0: i32, %arg1: i32) -> (i32, i32, i32, i32) {
    %c0_i32 = arith.constant 0 : i32
    %c0_i32_0 = arith.constant 0 : i32
    %c0_i32_1 = arith.constant 0 : i32
    return %arg0, %c0_i32, %arg1, %c0_i32_0 : i32, i32, i32, i32
  }
  func.func @transform_1(%arg0: i32, %arg1: i32) -> (i32, i32) {
    %c0_i32 = arith.constant 0 : i32
    %c0_i32_0 = arith.constant 0 : i32
    %c0_i32_1 = arith.constant 0 : i32
    return %c0_i32, %c0_i32_0 : i32, i32
  }
  func.func @transform_2(%arg0: i32, %arg1: i32) -> (i32, i32) {
    %c0_i32 = arith.constant 0 : i32
    %c0_i32_0 = arith.constant 0 : i32
    %c0_i32_1 = arith.constant 0 : i32
    return %c0_i32, %c0_i32_0 : i32, i32
  }
  func.func @transform_3(%arg0: i32, %arg1: i32) -> (i32, i32) {
    %c0_i32 = arith.constant 0 : i32
    %c0_i32_0 = arith.constant 0 : i32
    %c0_i32_1 = arith.constant 0 : i32
    return %c0_i32, %c0_i32_0 : i32, i32
  }
  func.func @transform_4(%arg0: i32, %arg1: i32) -> (i32, i32) {
    %c0_i32 = arith.constant 0 : i32
    %c0_i32_0 = arith.constant 0 : i32
    %c0_i32_1 = arith.constant 0 : i32
    return %c0_i32, %c0_i32_0 : i32, i32
  }
  func.func @transform_5(%arg0: i32, %arg1: i32) -> (i32, i32) {
    %c0_i32 = arith.constant 0 : i32
    %c0_i32_0 = arith.constant 0 : i32
    %c0_i32_1 = arith.constant 0 : i32
    return %c0_i32, %c0_i32_0 : i32, i32
  }
  func.func @transform_6(%arg0: i32, %arg1: i32) -> (i32, i32) {
    %c0_i32 = arith.constant 0 : i32
    %c0_i32_0 = arith.constant 0 : i32
    %c0_i32_1 = arith.constant 0 : i32
    return %c0_i32, %c0_i32_0 : i32, i32
  }
  func.func @transform_7(%arg0: i32, %arg1: i32) -> (i32, i32) {
    %c0_i32 = arith.constant 0 : i32
    %c0_i32_0 = arith.constant 0 : i32
    %c0_i32_1 = arith.constant 0 : i32
    return %c0_i32, %c0_i32_0 : i32, i32
  }
  func.func @transform_8(%arg0: i32, %arg1: i32) -> (i32, i32) {
    %c0_i32 = arith.constant 0 : i32
    %c0_i32_0 = arith.constant 0 : i32
    %c0_i32_1 = arith.constant 0 : i32
    return %c0_i32, %c0_i32_0 : i32, i32
  }
  func.func @transform_9(%arg0: i32, %arg1: i32) -> (i32, i32, i32) {
    %c0_i32 = arith.constant 0 : i32
    %c0_i32_0 = arith.constant 0 : i32
    %c0_i32_1 = arith.constant 0 : i32
    return %arg0, %c0_i32, %c0_i32_0 : i32, i32, i32
  }
  func.func @transform_10(%arg0: i32, %arg1: i32) -> (i32, i32, i32) {
    %c0_i32 = arith.constant 0 : i32
    %c0_i32_0 = arith.constant 0 : i32
    %c0_i32_1 = arith.constant 0 : i32
    return %arg0, %c0_i32, %c0_i32_0 : i32, i32, i32
  }
}

</mosaic_0001>

<bundles_post_ra>
// kernel: forward.2
= control target key start
LH: loop header
LB: loop body
LE: loop exit
PB: predicated region body
PF: predicated region fallthrough
CT: control target
= control target key end

     0   :  { %16 = vsyncpa [#allocation4], 0  ;;  %vm264_vm0 = vcmask 261120   ;;  %s1514_s0 = inlined_call_operand.vmem [shape: bf16[32,128], index: 0, kind: input, shape index: {}]   ;;  %s1515_s1 = inlined_call_operand.vmem [shape: f32[1,128], index: 1, kind: input, shape index: {}]   ;;  %s1516_s2 = inlined_call_operand.vmem [shape: bf16[128,128], index: 2, kind: input, shape index: {}]   ;;  %s1517_s3 = inlined_call_operand.vmem [shape: f32[1,128], index: 3, kind: input, shape index: {}]   ;;  %s1518_s4 = inlined_call_operand.vmem [shape: bf16[128,128], index: 4, kind: input, shape index: {}]   ;;  %s1519_s5 = inlined_call_operand.vmem [shape: f32[1,128], index: 5, kind: input, shape index: {}]   ;;  %s1520_s6 = inlined_call_operand.vmem [shape: bf16[128,128], index: 6, kind: input, shape index: {}]   ;;  %s1521_s7 = inlined_call_operand.vmem [shape: f32[1,128], index: 7, kind: input, shape index: {}]   ;;  %s1522_s8 = inlined_call_operand.vmem [shape: bf16[2,8,8,32], index: 8, kind: input, shape index: {}]   ;;  %s1523_s9 = inlined_call_operand.hbm [shape: f32[1,2,128], index: 9, kind: output, shape index: {0}]   ;;  %s1524_s10 = inlined_call_operand.hbm [shape: f32[1,2,128], index: 10, kind: output, shape index: {1}]  }
   0x1   :  { %v1242_v0 = vld [vmem:[%s1514_s0 + $0x8] sm:$0xff]   ;;  %v1243_v1 = vld [vmem:[%s1514_s0] sm:$0xff]   ;;  %v1247_v4 = vld [vmem:[%s1522_s8 + $0x10] sm:$0xff]  }
   0x2   :  { %1134 = vmatprep.subr.bf16.mxu0 %v1242_v0  ;;  %v36_v2 = vld [vmem:[%s1522_s8] sm:$0xff]   ;;  %v1245_v3 = vld [vmem:[%s1522_s8 + $0x8] sm:$0xff]   ;;  %v1249_v5 = vld [vmem:[%s1522_s8 + $0x18] sm:$0xff]   ;;  %1050 = vst [vmem:[#allocation7 + $0x10] sm:$0xff] %v1247_v4  }
   0x3   :  { %1135 = vmatpush3.bf16.msra.mxu0 %v1242_v0  ;;  %42 = vst [vmem:[#allocation7] sm:$0xff] %v36_v2   ;;  %1045 = vst [vmem:[#allocation7 + $0x8] sm:$0xff] %v1245_v3   ;;  %v1251_v6 = vld [vmem:[%s1522_s8 + $0x20] sm:$0xff]   ;;  %v1253_v7 = vld [vmem:[%s1522_s8 + $0x28] sm:$0xff]  }
   0x4   :  { %1136 = vmatprep.subr.bf16.mxu0 %v1243_v1  ;;  %1055 = vst [vmem:[#allocation7 + $0x18] sm:$0xff] %v1249_v5   ;;  %1060 = vst [vmem:[#allocation7 + $0x20] sm:$0xff] %v1251_v6   ;;  %v1255_v8 = vld [vmem:[%s1522_s8 + $0x30] sm:$0xff]   ;;  %v1257_v9 = vld [vmem:[%s1522_s8 + $0x38] sm:$0xff]  }
   0x5   :  { %1065 = vst [vmem:[#allocation7 + $0x28] sm:$0xff] %v1253_v7   ;;  %1070 = vst [vmem:[#allocation7 + $0x30] sm:$0xff] %v1255_v8   ;;  %v1259_v11 = vld [vmem:[%s1516_s2 + $0x38] sm:$0xff]   ;;  %v1260_v16 = vld [vmem:[%s1516_s2 + $0x30] sm:$0xff]  }
   0x6   :  { %1075 = vst [vmem:[#allocation7 + $0x38] sm:$0xff] %v1257_v9   ;;  %1154 = vmatprep.subr.bf16.mxu1 %v1259_v11  ;;  %v1261_v17 = vld [vmem:[%s1516_s2 + $0x28] sm:$0xff]   ;;  %v1262_v18 = vld [vmem:[%s1516_s2 + $0x20] sm:$0xff]   ;;  %v1263_v21 = vld [vmem:[%s1516_s2 + $0x18] sm:$0xff]  }
   0x7   :  { %1137 = vmatpush3.bf16.msra.mxu0 %v1243_v1  ;;  %1155 = vmatpush3.bf16.msra.mxu1 %v1259_v11 }
   0x8   :  { %1156 = vmatprep.subr.bf16.mxu1 %v1260_v16 }
   0x9   :  { %v1248_v13 = vld [vmem:[#allocation7 + $0x10] sm:$0xff]  }
   0xa   :  { %v1244_v10 = vld [vmem:[#allocation7] sm:$0xff]   ;;  %v1246_v12 = vld [vmem:[#allocation7 + $0x8] sm:$0xff]  }
   0xb   :  { %1138 = vmatprep.mubr.msk.bf16.mxu0 %vm264_vm0, %v1244_v10  ;;  %v1250_v14 = vld [vmem:[#allocation7 + $0x18] sm:$0xff]   ;;  %v1252_v15 = vld [vmem:[#allocation7 + $0x20] sm:$0xff]   ;;  %1157 = vmatpush3.bf16.msra.mxu1 %v1260_v16 }
   0xc   :  { %1139 = vmatmul.mubr.msk.bf16.vlgmr.msra.gmra.mxu0 %vm264_vm0, %v1246_v12  ;;  %1158 = vmatprep.subr.bf16.mxu1 %v1261_v17  ;;  %v1254_v19 = vld [vmem:[#allocation7 + $0x28] sm:$0xff]   ;;  %v1256_v20 = vld [vmem:[#allocation7 + $0x30] sm:$0xff]  }
   0xd   :  { %1142 = vmatprep.mubr.msk.bf16.mxu0 %vm264_vm0, %v1248_v13  ;;  %v1258_v22 = vld [vmem:[#allocation7 + $0x38] sm:$0xff]  }
   0xf   :  { %1159 = vmatpush3.bf16.msra.mxu1 %v1261_v17 }
  0x10   :  { %1160 = vmatprep.subr.bf16.mxu1 %v1262_v18 }
  0x13   :  { %1161 = vmatpush3.bf16.msra.mxu1 %v1262_v18 }
  0x14   :  { %1143 = vmatmul.mubr.msk.bf16.gmra.mxu0 %vm264_vm0, %v1250_v14  ;;  %1162 = vmatprep.subr.bf16.mxu1 %v1263_v21 }
  0x15   :  { %1146 = vmatprep.mubr.msk.bf16.mxu0 %vm264_vm0, %v1252_v15 }
  0x17   :  { %1163 = vmatpush3.bf16.msra.mxu1 %v1263_v21 }
  0x1c   :  { %1147 = vmatmul.mubr.msk.bf16.gmra.mxu0 %vm264_vm0, %v1254_v19 }
  0x1d   :  { %1150 = vmatprep.mubr.msk.bf16.mxu0 %vm264_vm0, %v1256_v20 }
  0x1e   :  { %17 = vsyncpa [#allocation6], 0  ;;  %v1264_v23 = vld [vmem:[%s1516_s2 + $0x10] sm:$0xff]   ;;  %v1265_v24 = vld [vmem:[%s1516_s2 + $0x8] sm:$0xff]   ;;  %vm1328_vm1 = vmmov 0   ;;  %vm827_vm2 = vcmask 1041409  }
  0x1f   :  { %1164 = vmatprep.subr.bf16.mxu1 %v1264_v23  ;;  %v1266_v25 = vld [vmem:[%s1516_s2] sm:$0xff]   ;;  %v1267_v26 = vld [vmem:[%s1518_s4 + $0x38] sm:$0xff]   ;;  %v1268_v27 = vld [vmem:[%s1518_s4 + $0x30] sm:$0xff]  }
  0x20   :  { %1165 = vmatpush3.bf16.msra.mxu1 %v1264_v23  ;;  %1186 = vmatprep.subr.bf16.mxu0 %v1267_v26  ;;  %v1269_v28 = vld [vmem:[%s1518_s4 + $0x28] sm:$0xff]   ;;  %v1270_v29 = vld [vmem:[%s1518_s4 + $0x20] sm:$0xff]   ;;  %v1271_v30 = vld [vmem:[%s1518_s4 + $0x18] sm:$0xff]  }
  0x21   :  { %1166 = vmatprep.subr.bf16.mxu1 %v1265_v24  ;;  %1187 = vmatpush3.bf16.msra.mxu0 %v1267_v26  ;;  %v995_v33 = vld [vmem:[%s1515_s1] ss:$0 sm:$0xff] }
  0x22   :  { %1188 = vmatprep.subr.bf16.mxu0 %v1268_v27  ;;  %v1274_v26 = vld [vmem:[%s1518_s4] sm:$0xff]  }
  0x24   :  { %1151 = vmatmul.mubr.msk.bf16.gmra.mxu0 %vm264_vm0, %v1258_v22  ;;  %1167 = vmatpush3.bf16.msra.mxu1 %v1265_v24  ;;  %v1272_v24 = vld [vmem:[%s1518_s4 + $0x10] sm:$0xff]  }
  0x25   :  { %1168 = vmatprep.subr.bf16.mxu1 %v1266_v25  ;;  %1189 = vmatpush3.bf16.msra.mxu0 %v1268_v27 }
  0x26   :  { %1190 = vmatprep.subr.bf16.mxu0 %v1269_v28 }
  0x28   :  { %1169 = vmatpush3.bf16.msra.mxu1 %v1266_v25  ;;  %v1273_v25 = vld [vmem:[%s1518_s4 + $0x8] sm:$0xff]  }
  0x29   :  { %1191 = vmatpush3.bf16.msra.mxu0 %v1269_v28 }
  0x2a   :  { %1192 = vmatprep.subr.bf16.mxu0 %v1270_v29 }
  0x2d   :  { %1193 = vmatpush3.bf16.msra.mxu0 %v1270_v29  ;;  %v1014_v29 = vld [vmem:[%s1517_s3] ss:$0 sm:$0xff] }
  0x2e   :  { %1194 = vmatprep.subr.bf16.mxu0 %v1271_v30 }
  0x31   :  { %1195 = vmatpush3.bf16.msra.mxu0 %v1271_v30 }
  0x32   :  { %1196 = vmatprep.subr.bf16.mxu0 %v1272_v24 }
  0x35   :  { %1197 = vmatpush3.bf16.msra.mxu0 %v1272_v24  ;;  %v1278_v24 = vld [vmem:[%s1520_s6 + $0x20] sm:$0xff]  }
  0x36   :  { %1198 = vmatprep.subr.bf16.mxu0 %v1273_v25 }
  0x39   :  { %1199 = vmatpush3.bf16.msra.mxu0 %v1273_v25  ;;  %v1279_v25 = vld [vmem:[%s1520_s6 + $0x18] sm:$0xff]  }
  0x3a   :  { %1200 = vmatprep.subr.bf16.mxu0 %v1274_v26 }
  0x3d   :  { %1201 = vmatpush3.bf16.msra.mxu0 %v1274_v26  ;;  %v1280_v26 = vld [vmem:[%s1520_s6 + $0x10] sm:$0xff]  }
  0xcc   :  { %v1140_v31 = vpop.f32.mrf.mxu0 }
  0xcd   :  { %v332_v37 = vadd.f32 %v1140_v31, %v995_v33 }
  0xce   :  { %v323_v32 = vpop.f32.mrf.mxu0 }
  0xcf   :  { %v324_v35 = vadd.f32 %v995_v33, %v323_v32  ;;  %v388_v44 = vmax.f32 %v332_v37, 0.0 }
  0xd0   :  { %v1141_v34 = vpop.f32.mrf.mxu0 }
  0xd1   :  { %v335_v36 = vadd.f32 %v1141_v34, %v995_v33  ;;  %v386_v42 = vmax.f32 %v324_v35, 0.0 }
  0xd2   :  { %v326_v38 = vpop.f32.mrf.mxu0 }
  0xd3   :  { %v327_v39 = vadd.f32 %v995_v33, %v326_v38  ;;  %v389_v40 = vmax.f32 %v335_v36, 0.0 }
  0xd4   :  { %v1144_v41 = vpop.f32.mrf.mxu0 }
  0xd5   :  { %v387_v43 = vmax.f32 %v327_v39, 0.0  ;;  %v403_v47 = vpack.c.bf16 %v389_v40, %v388_v44  ;;  %v348_v51 = vadd.f32 %v1144_v41, %v995_v33 }
  0xd6   :  { %v339_v45 = vpop.f32.mrf.mxu0 }
  0xd7   :  { %v402_v46 = vpack.c.bf16 %v387_v43, %v386_v42  ;;  %v340_v49 = vadd.f32 %v995_v33, %v339_v45  ;;  %v392_v58 = vmax.f32 %v348_v51, 0.0 }
  0xd8   :  { %v1145_v48 = vpop.f32.mrf.mxu0 }
  0xd9   :  { %v351_v50 = vadd.f32 %v1145_v48, %v995_v33  ;;  %1170 = vmatprep.mubr.bf16.mxu1 %v402_v46  ;;  %v390_v56 = vmax.f32 %v340_v49, 0.0 }
  0xda   :  { %v342_v52 = vpop.f32.mrf.mxu0  ;;  %1171 = vmatmul.mubr.bf16.vlgmr.msra.gmra.mxu1 %v403_v47 }
  0xdb   :  { %v343_v53 = vadd.f32 %v995_v33, %v342_v52  ;;  %v393_v54 = vmax.f32 %v351_v50, 0.0 }
  0xdc   :  { %v1148_v55 = vpop.f32.mrf.mxu0 }
  0xdd   :  { %v391_v57 = vmax.f32 %v343_v53, 0.0  ;;  %v405_v61 = vpack.c.bf16 %v393_v54, %v392_v58  ;;  %v364_v1 = vadd.f32 %v1148_v55, %v995_v33 }
  0xde   :  { %v355_v59 = vpop.f32.mrf.mxu0 }
  0xdf   :  { %v404_v60 = vpack.c.bf16 %v391_v57, %v390_v56  ;;  %v356_v63 = vadd.f32 %v995_v33, %v355_v59  ;;  %v396_v8 = vmax.f32 %v364_v1, 0.0 }
  0xe0   :  { %v1149_v62 = vpop.f32.mrf.mxu0 }
  0xe1   :  { %v367_v0 = vadd.f32 %v1149_v62, %v995_v33  ;;  %1174 = vmatprep.mubr.bf16.mxu1 %v404_v60  ;;  %v394_v6 = vmax.f32 %v356_v63, 0.0 }
  0xe2   :  { %v358_v2 = vpop.f32.mrf.mxu0  ;;  %1175 = vmatmul.mubr.bf16.gmra.mxu1 %v405_v61 }
  0xe3   :  { %v359_v3 = vadd.f32 %v995_v33, %v358_v2  ;;  %v397_v4 = vmax.f32 %v367_v0, 0.0 }
  0xe4   :  { %v1152_v5 = vpop.f32.mrf.mxu0 }
  0xe5   :  { %v395_v7 = vmax.f32 %v359_v3, 0.0  ;;  %v407_v11 = vpack.c.bf16 %v397_v4, %v396_v8  ;;  %v380_v15 = vadd.f32 %v1152_v5, %v995_v33 }
  0xe6   :  { %v371_v9 = vpop.f32.mrf.mxu0 }
  0xe7   :  { %v406_v10 = vpack.c.bf16 %v395_v7, %v394_v6  ;;  %v372_v13 = vadd.f32 %v995_v33, %v371_v9  ;;  %v400_v21 = vmax.f32 %v380_v15, 0.0 }
  0xe8   :  { %v1153_v12 = vpop.f32.mrf.mxu0 }
  0xe9   :  { %v383_v14 = vadd.f32 %v1153_v12, %v995_v33  ;;  %1178 = vmatprep.mubr.bf16.mxu1 %v406_v10  ;;  %v398_v19 = vmax.f32 %v372_v13, 0.0 }
  0xea   :  { %v374_v16 = vpop.f32.mrf.mxu0  ;;  %1179 = vmatmul.mubr.bf16.gmra.mxu1 %v407_v11 }
  0xeb   :  { %v375_v17 = vadd.f32 %v995_v33, %v374_v16  ;;  %v401_v18 = vmax.f32 %v383_v14, 0.0 }
  0xed   :  { %v399_v20 = vmax.f32 %v375_v17, 0.0  ;;  %v409_v23 = vpack.c.bf16 %v401_v18, %v400_v21  ;;  %v1327_v21 = vmov 0.0  }
  0xee   :  { %1218 = vmatprep.subr.bf16.mxu1 %v1327_v21 }
  0xef   :  { %v408_v22 = vpack.c.bf16 %v399_v20, %v398_v19  ;;  %v1275_v20 = vld [vmem:[%s1520_s6 + $0x38] sm:$0xff]  }
  0xf0   :  { %1219 = vmatpush3.bf16.msra.mxu1 %v1275_v20 }
  0xf1   :  { %1182 = vmatprep.mubr.bf16.mxu1 %v408_v22  ;;  %1220 = vmatprep.subr.bf16.mxu1 %v1327_v21  ;;  %v1276_v22 = vld [vmem:[%s1520_s6 + $0x30] sm:$0xff]  }
  0xf2   :  { %1183 = vmatmul.mubr.bf16.gmra.mxu1 %v409_v23  ;;  %v1277_v23 = vld [vmem:[%s1520_s6 + $0x28] sm:$0xff]  }
  0xf3   :  { %1234 = vmatprep.mubr.msk.bf16.mxu1 %vm1328_vm1, %v1327_v21 }
  0xf4   :  { %1221 = vmatpush3.bf16.msra.mxu1 %v1276_v22 }
  0xf5   :  { %1222 = vmatprep.subr.bf16.mxu1 %v1327_v21 }
  0xf8   :  { %1223 = vmatpush3.bf16.msra.mxu1 %v1277_v23 }
  0xf9   :  { %1224 = vmatprep.subr.bf16.mxu1 %v1327_v21 }
  0xfc   :  { %1225 = vmatpush3.bf16.msra.mxu1 %v1278_v24 }
  0xfd   :  { %1226 = vmatprep.subr.bf16.mxu1 %v1327_v21 }
 0x100   :  { %1227 = vmatpush3.bf16.msra.mxu1 %v1279_v25 }
 0x101   :  { %1228 = vmatprep.subr.bf16.mxu1 %v1327_v21 }
 0x104   :  { %1229 = vmatpush3.bf16.msra.mxu1 %v1280_v26 }
 0x105   :  { %1230 = vmatprep.subr.bf16.mxu1 %v1327_v21 }
 0x19a   :  { %v1172_v27 = vpop.f32.mrf.mxu1 }
 0x19b   :  { %v524_v33 = vadd.f32 %v1172_v27, %v1014_v29  ;;  %v1281_v27 = vld [vmem:[%s1520_s6 + $0x8] sm:$0xff]  }
 0x19c   :  { %v515_v28 = vpop.f32.mrf.mxu1  ;;  %1231 = vmatpush3.bf16.msra.mxu1 %v1281_v27 }
 0x19d   :  { %v516_v31 = vadd.f32 %v1014_v29, %v515_v28  ;;  %v580_v40 = vmax.f32 %v524_v33, 0.0  ;;  %1232 = vmatprep.subr.bf16.mxu1 %v1327_v21  ;;  %v1282_v28 = vld [vmem:[%s1520_s6] sm:$0xff]  }
 0x19e   :  { %v1173_v30 = vpop.f32.mrf.mxu1 }
 0x19f   :  { %v527_v32 = vadd.f32 %v1173_v30, %v1014_v29  ;;  %v578_v38 = vmax.f32 %v516_v31, 0.0  ;;  %v1023_v31 = vld [vmem:[%s1519_s5] ss:$0 sm:$0xff]  ;;  %s1329_s5 = smov [#allocation5]  }
 0x1a0   :  { %v518_v34 = vpop.f32.mrf.mxu1  ;;  %1233 = vmatpush3.bf16.msra.mxu1 %v1282_v28  ;;  %s968_s6 = sshll.u32 %s1329_s5, 4  ;;  %s969_s6 = int_to_ptr.vmem [resolvable:$true] %s968_s6 }
 0x1a1   :  { %v519_v35 = vadd.f32 %v1014_v29, %v518_v34  ;;  %v581_v36 = vmax.f32 %v527_v32, 0.0  ;;  %s1283_s1 = scalar_lea.vmem %s969_s6, 32  ;;  %p1288_p1 = scmp.lt.s32.totalorder %s969_s6, %s969_s6 }
 0x1a2   :  { %v1176_v37 = vpop.f32.mrf.mxu1  ;;  %p1284_p0 = scmp.ne.s32.totalorder %s969_s6, %s1283_s1  ;;  %p1289_p2 = scmp.lt.s32.totalorder %s1283_s1, %s1283_s1 }
 0x1a3   :  { %v579_v39 = vmax.f32 %v519_v35, 0.0  ;;  %v595_v43 = vpack.c.bf16 %v581_v36, %v580_v40  ;;  %v540_v47 = vadd.f32 %v1176_v37, %v1014_v29 }
 0x1a4   :  { %v531_v41 = vpop.f32.mrf.mxu1  ;;  %p1290_p3 = por %p1289_p2, %p1288_p1 }
 0x1a5   :  { %v594_v42 = vpack.c.bf16 %v579_v39, %v578_v38  ;;  %v532_v45 = vadd.f32 %v1014_v29, %v531_v41  ;;  %v584_v54 = vmax.f32 %v540_v47, 0.0 }
 0x1a6   :  { %v1177_v44 = vpop.f32.mrf.mxu1  ;;  %p1291_p4 = pnand %p1290_p3, %p1284_p0 }
 0x1a7   :  { %v543_v46 = vadd.f32 %v1177_v44, %v1014_v29  ;;  %1202 = vmatprep.mubr.bf16.mxu0 %v594_v42  ;;  %v582_v52 = vmax.f32 %v532_v45, 0.0 }
 0x1a8   :  { %v534_v48 = vpop.f32.mrf.mxu1  ;;  %1203 = vmatmul.mubr.bf16.vlgmr.msra.gmra.mxu0 %v595_v43 }
 0x1a9   :  { %v535_v49 = vadd.f32 %v1014_v29, %v534_v48  ;;  %v585_v50 = vmax.f32 %v543_v46, 0.0 }
 0x1aa   :  { %v1180_v51 = vpop.f32.mrf.mxu1 }
 0x1ab   :  { %v583_v53 = vmax.f32 %v535_v49, 0.0  ;;  %v597_v57 = vpack.c.bf16 %v585_v50, %v584_v54  ;;  %v556_v61 = vadd.f32 %v1180_v51, %v1014_v29 }
 0x1ac   :  { %v547_v55 = vpop.f32.mrf.mxu1 }
 0x1ad   :  { %v596_v56 = vpack.c.bf16 %v583_v53, %v582_v52  ;;  %v548_v59 = vadd.f32 %v1014_v29, %v547_v55  ;;  %v588_v4 = vmax.f32 %v556_v61, 0.0 }
 0x1ae   :  { %v1181_v58 = vpop.f32.mrf.mxu1 }
 0x1af   :  { %v559_v60 = vadd.f32 %v1181_v58, %v1014_v29  ;;  %1206 = vmatprep.mubr.bf16.mxu0 %v596_v56  ;;  %v586_v2 = vmax.f32 %v548_v59, 0.0 }
 0x1b0   :  { %v550_v62 = vpop.f32.mrf.mxu1  ;;  %1207 = vmatmul.mubr.bf16.gmra.mxu0 %v597_v57 }
 0x1b1   :  { %v551_v63 = vadd.f32 %v1014_v29, %v550_v62  ;;  %v589_v0 = vmax.f32 %v559_v60, 0.0 }
 0x1b2   :  { %v1184_v1 = vpop.f32.mrf.mxu1 }
 0x1b3   :  { %v587_v3 = vmax.f32 %v551_v63, 0.0  ;;  %v599_v7 = vpack.c.bf16 %v589_v0, %v588_v4  ;;  %v572_v11 = vadd.f32 %v1184_v1, %v1014_v29 }
 0x1b4   :  { %v563_v5 = vpop.f32.mrf.mxu1 }
 0x1b5   :  { %v598_v6 = vpack.c.bf16 %v587_v3, %v586_v2  ;;  %v564_v9 = vadd.f32 %v1014_v29, %v563_v5  ;;  %v592_v17 = vmax.f32 %v572_v11, 0.0 }
 0x1b6   :  { %v1185_v8 = vpop.f32.mrf.mxu1 }
 0x1b7   :  { %v575_v10 = vadd.f32 %v1185_v8, %v1014_v29  ;;  %1210 = vmatprep.mubr.bf16.mxu0 %v598_v6  ;;  %v590_v15 = vmax.f32 %v564_v9, 0.0 }
 0x1b8   :  { %v566_v12 = vpop.f32.mrf.mxu1  ;;  %1211 = vmatmul.mubr.bf16.gmra.mxu0 %v599_v7 }
 0x1b9   :  { %v567_v13 = vadd.f32 %v1014_v29, %v566_v12  ;;  %v593_v14 = vmax.f32 %v575_v10, 0.0 }
 0x1bb   :  { %v591_v16 = vmax.f32 %v567_v13, 0.0  ;;  %v601_v19 = vpack.c.bf16 %v593_v14, %v592_v17 }
 0x1bd   :  { %v600_v18 = vpack.c.bf16 %v591_v16, %v590_v15 }
 0x1bf   :  { %1214 = vmatprep.mubr.bf16.mxu0 %v600_v18 }
 0x1c0   :  { %1215 = vmatmul.mubr.bf16.gmra.mxu0 %v601_v19 }
 0x268   :  { %v1204_v29 = vpop.f32.mrf.mxu0 }
 0x269   :  { %v716_v35 = vadd.f32 %v1204_v29, %v1023_v31 }
 0x26a   :  { %v707_v30 = vpop.f32.mrf.mxu0 }
 0x26b   :  { %v708_v33 = vadd.f32 %v1023_v31, %v707_v30  ;;  %v772_v42 = vmax.f32 %v716_v35, 0.0 }
 0x26c   :  { %v1205_v32 = vpop.f32.mrf.mxu0 }
 0x26d   :  { %v770_v38 = vmax.f32 %v708_v33, 0.0  ;;  %v719_v39 = vadd.f32 %v1205_v32, %v1023_v31 }
 0x26e   :  { %v710_v34 = vpop.f32.mrf.mxu0 }
 0x26f   :  { %v711_v36 = vadd.f32 %v1023_v31, %v710_v34  ;;  %v773_v46 = vmax.f32 %v719_v39, 0.0 }
 0x270   :  { %v1208_v37 = vpop.f32.mrf.mxu0 }
 0x271   :  { %v771_v40 = vmax.f32 %v711_v36, 0.0  ;;  %v732_v49 = vadd.f32 %v1208_v37, %v1023_v31 }
 0x272   :  { %v723_v41 = vpop.f32.mrf.mxu0 }
 0x273   :  { %v786_v43 = vadd.f32 %v771_v40, %v770_v38  ;;  %v724_v44 = vadd.f32 %v1023_v31, %v723_v41  ;;  %v776_v58 = vmax.f32 %v732_v49, 0.0 }
 0x274   :  { %v1209_v45 = vpop.f32.mrf.mxu0 }
 0x275   :  { %v788_v47 = vadd.f32 %v786_v43, %v772_v42  ;;  %v774_v50 = vmax.f32 %v724_v44, 0.0  ;;  %v735_v55 = vadd.f32 %v1209_v45, %v1023_v31 }
 0x276   :  { %v726_v48 = vpop.f32.mrf.mxu0 }
 0x277   :  { %v790_v51 = vadd.f32 %v788_v47, %v773_v46  ;;  %v727_v52 = vadd.f32 %v1023_v31, %v726_v48  ;;  %v777_v61 = vmax.f32 %v735_v55, 0.0 }
 0x278   :  { %v1212_v53 = vpop.f32.mrf.mxu0 }
 0x279   :  { %v792_v54 = vadd.f32 %v790_v51, %v774_v50  ;;  %v775_v56 = vmax.f32 %v727_v52, 0.0  ;;  %v748_v2 = vadd.f32 %v1212_v53, %v1023_v31 }
 0x27a   :  { %v739_v57 = vpop.f32.mrf.mxu0 }
 0x27b   :  { %v794_v59 = vadd.f32 %v792_v54, %v775_v56  ;;  %v740_v63 = vadd.f32 %v1023_v31, %v739_v57  ;;  %v780_v10 = vmax.f32 %v748_v2, 0.0 }
 0x27c   :  { %v1213_v60 = vpop.f32.mrf.mxu0 }
 0x27d   :  { %v796_v62 = vadd.f32 %v794_v59, %v776_v58  ;;  %v778_v6 = vmax.f32 %v740_v63, 0.0  ;;  %v751_v7 = vadd.f32 %v1213_v60, %v1023_v31 }
 0x27e   :  { %v742_v0 = vpop.f32.mrf.mxu0 }
 0x27f   :  { %v798_v1 = vadd.f32 %v796_v62, %v777_v61  ;;  %v743_v3 = vadd.f32 %v1023_v31, %v742_v0  ;;  %v781_v15 = vmax.f32 %v751_v7, 0.0 }
 0x280   :  { %v1216_v4 = vpop.f32.mrf.mxu0 }
 0x281   :  { %v811_v5 = vrot.slane %v798_v1, 4  ;;  %v779_v8 = vmax.f32 %v743_v3, 0.0  ;;  %v764_v18 = vadd.f32 %v1216_v4, %v1023_v31 }
 0x282   :  { %v755_v9 = vpop.f32.mrf.mxu0 }
 0x283   :  { %v787_v11 = vadd.f32 %v779_v8, %v778_v6  ;;  %v756_v12 = vadd.f32 %v1023_v31, %v755_v9  ;;  %v812_v14 = vadd.f32 %v811_v5, %v798_v1  ;;  %v784_v26 = vmax.f32 %v764_v18, 0.0 }
 0x284   :  { %v1217_v13 = vpop.f32.mrf.mxu0 }
 0x285   :  { %v789_v16 = vadd.f32 %v787_v11, %v780_v10  ;;  %v782_v19 = vmax.f32 %v756_v12, 0.0  ;;  %v813_v22 = vrot.slane %v812_v14, 2  ;;  %v767_v24 = vadd.f32 %v1217_v13, %v1023_v31 }
 0x286   :  { %v758_v17 = vpop.f32.mrf.mxu0 }
 0x287   :  { %v791_v20 = vadd.f32 %v789_v16, %v781_v15  ;;  %v759_v21 = vadd.f32 %v1023_v31, %v758_v17  ;;  %v814_v28 = vadd.f32 %v813_v22, %v812_v14  ;;  %v785_v29 = vmax.f32 %v767_v24, 0.0 }
 0x289   :  { %v793_v23 = vadd.f32 %v791_v20, %v782_v19  ;;  %v783_v25 = vmax.f32 %v759_v21, 0.0  ;;  %v815_v33 = vrot.slane %v814_v28, 1 }
 0x28b   :  { %v795_v27 = vadd.f32 %v793_v23, %v783_v25  ;;  %v816_v36 = vadd.f32 %v815_v33, %v814_v28 }
 0x28d   :  { %v797_v30 = vadd.f32 %v795_v27, %v784_v26  ;;  %v823_v39 = vmul.f32 0.015625, %v816_v36 }
 0x28f   :  { %v799_v32 = vadd.f32 %v797_v30, %v785_v29  ;;  %v831_v42 = vpack.c.bf16 %v823_v39, %v823_v39 }
 0x291   :  { %v817_v34 = vrot.slane %v799_v32, 4  ;;  %v858_v45 = vunpack.c.l.b16 %v831_v42 }
 0x293   :  { %v818_v35 = vadd.f32 %v817_v34, %v799_v32 }
 0x295   :  { %v819_v37 = vrot.slane %v818_v35, 2 }
 0x297   :  { %v820_v38 = vadd.f32 %v819_v37, %v818_v35 }
 0x299   :  { %v821_v40 = vrot.slane %v820_v38, 1 }
 0x29b   :  { %v822_v41 = vadd.f32 %v821_v40, %v820_v38 }
 0x29d   :  { %v824_v43 = vmul.f32 0.015625, %v822_v41 }
 0x29f   :  { %v832_v31 = vpack.c.bf16 %v824_v43, %v824_v43  ;;  %v828_v44 = vsel %vm827_vm2, %v824_v43, %v823_v39 }
 0x2a0   :  { %830 = vst [vmem:[#allocation5] sm:$0x3] %v828_v44 }
 0x2a1   :  { %v859_v46 = vunpack.c.l.b16 %v832_v31 }
 0x2a3   :  { %v860_v47 = vsel %vm827_vm2, %v859_v46, %v858_v45 }
 0x2a4   :  { %v861_v48 = vpack.c.b16 %v860_v47, %v860_v47 }
 0x2a6   :  { %1235 = vmatmul.mubr.bf16.vlgmr.msra.gmra.mxu1 %v861_v48 }
 0x2a7   :  { %1294 = shalt.err (!%p1291_p4)
}
 0x2a8   :  { %971 = dma.vmem_to_hbm [thread:$0]  %s969_s6, 32, %s1524_s10, [#allocation6]   ;;  %v1032_v49 = vld [vmem:[%s1521_s7] ss:$0 sm:$0xff] }
 0x2a9   :  { %s1330_s20 = smov [#allocation3]  }
 0x2aa   :  { %s958_s21 = sshll.u32 %s1330_s20, 4  ;;  %s959_s21 = int_to_ptr.vmem [resolvable:$true] %s958_s21 }
 0x2ab   :  { %s1303_s22 = scalar_lea.vmem %s959_s21, 32  ;;  %p1308_p6 = scmp.lt.s32.totalorder %s959_s21, %s959_s21 }
 0x2ac   :  { %p1304_p5 = scmp.ne.s32.totalorder %s959_s21, %s1303_s22  ;;  %p1309_p7 = scmp.lt.s32.totalorder %s1303_s22, %s1303_s22 }
 0x2ae   :  { %p1310_p8 = por %p1309_p7, %p1308_p6 }
 0x2b0   :  { %p1311_p9 = pnand %p1310_p8, %p1304_p5 }
 0x366   :  { %v945_v50 = vpop.f32.mrf.mxu1 }
 0x367   :  { %v946_v51 = vadd.f32 %v1032_v49, %v945_v50 }
 0x368   :  { %v1236_v52 = vpop.f32.mrf.mxu1 }
 0x369   :  { %951 = vst [vmem:[#allocation3] sm:$0x3] %v946_v51 }
 0x36a   :  { %v948_v53 = vpop.f32.mrf.mxu1 }
 0x36b   :  { %1314 = shalt.err (!%p1311_p9)
}
 0x36c   :  { %961 = dma.vmem_to_hbm [thread:$0]  %s959_s21, 32, %s1523_s9, [#allocation4]   ;;  %v1237_v54 = vpop.f32.mrf.mxu1 }
 0x36d   :  { %1323 = dma.done.wait [#allocation4], 32  }
 0x36e   :  { %1324 = vsyncadd [#allocation4], 4294967264 }
 0x36f   :  { %1325 = dma.done.wait [#allocation6], 32  }
 0x370   :  { %1326 = vsyncadd [#allocation6], 4294967264 }
 0x371   :  { %978 = vsyncpa [#allocation4], 1 }
 0x372   :  { %979 = vsyncpa [#allocation6], 1 }

</bundles_post_ra>
